<compile_context>
chip_gen: v6e
topology: v6e:2x2x1
jax: 0.10.0
libtpu: 0.0.40
codegen_flags: <defaults>
</compile_context>

<pallas_src>
import jax
import jax.numpy as jnp
from jax import lax
from jax.experimental import pallas as pl
from jax.experimental.pallas import tpu as pltpu


def _round_up(x, m):
    return ((x + m - 1) // m) * m


def _make_mlp_kernel(n_layers):
    """Fused MLP kernel body.

    Ref ordering: (x_ref, wT0, b0, ..., wT_{L-1}, b_{L-1}, out_ref).
    All weights are pre-transposed to (out, in); biases are (out, 1).
    Activations are kept batch-on-lanes: h has shape (features, tb).
    """

    def kernel(*refs):
        x_ref = refs[0]
        out_ref = refs[-1]
        p = refs[1:-1]

        x = x_ref[...]                                       # (tb, traj) f32

        # Layer 0: (h0, traj) . (tb, traj)^T -> (h0, tb).  transpose-rhs form;
        # Mosaic handles the minor-axis contraction of x (XLU is idle here).
        w0 = p[0][...]                                       # (h0, traj)
        b0 = p[1][...]                                       # (h0, 1)
        h = lax.dot_general(
            w0, x, dimension_numbers=(((1,), (1,)), ((), ())),
            preferred_element_type=jnp.float32)              # (h0, tb)
        h = jnp.maximum(h + b0, 0.0)

        # Remaining hidden layers: canonical (out, in) @ (in, tb) matmuls.
        for li in range(1, n_layers - 1):
            w = p[2 * li][...]                               # (out, in)
            b = p[2 * li + 1][...]                           # (out, 1)
            h = jnp.dot(w, h, preferred_element_type=jnp.float32)
            h = jnp.maximum(h + b, 0.0)

        # Final Linear(hidden, 1): (1, hidden) @ (hidden, tb) -> lane-dense (1, tb).
        w_l = p[2 * (n_layers - 1)][...]                     # (1, hidden_last)
        b_l = p[2 * (n_layers - 1) + 1][...]                 # (1, 1)
        score = jnp.dot(w_l, h, preferred_element_type=jnp.float32)
        out_ref[...] = (score + b_l).astype(out_ref.dtype)

    return kernel


def deepc_score_mlp(trajectory, weights, biases):
    """Fused-MLP DeepC score approximator (call under jax.jit).

    trajectory: (bs, trajectory_size) float32
    weights[i]: (in_i, out_i) float32   (last out_i == 1)
    biases[i] : (1, out_i)   float32
    returns   : (bs,) float32
    """
    bs, traj = trajectory.shape
    n_layers = len(weights)
    if bs == 0:
        return jnp.zeros((0,), jnp.float32)

    # ---- per-row VMEM footprint of a tile (lane/sublane padded, f32) --------
    max_w = max([traj] + [int(w.shape[1]) for w in weights])
    per_row_bytes = (
        2 * _round_up(traj, 128) * 4          # double-buffered x tile
        + 2 * 8 * 4                           # double-buffered (1, tb) out tile
        + 3 * _round_up(max_w, 8) * 4)        # live (features, tb) activation slabs
    vmem_budget = 24 << 20                    # headroom under v7x 64 MiB physical

    # ---- batch tiling policy -------------------------------------------------
    # bs < 256: one full-dim tile (no padding, no masking).
    # bs >= 256: largest 128-aligned tile fitting the VMEM budget, capped at
    # 8192 rows and at bs/2 so the 'parallel' grid keeps >= 2 steps (v7x 2 TCs).
    if bs < 256:
        tb = bs
        num_tiles = 1
    else:
        tb_cap = max(128, ((vmem_budget // per_row_bytes) // 128) * 128)
        tb = min(8192, tb_cap, max(128, ((bs // 2) // 128) * 128))
        num_tiles = pl.cdiv(bs, tb)           # ragged last block -> masked DMA/store

    # ---- parameter prep (tiny; fuses under jit) ------------------------------
    # TODO(synk): store the MLP parameters pre-transposed/(out,1)-shaped to skip
    # even this per-call prep.
    params = []
    param_bytes = 0
    for w, b in zip(weights, biases):
        wt = jnp.transpose(w).astype(jnp.float32)                    # (out, in)
        bc = jnp.reshape(b, (int(w.shape[1]), 1)).astype(jnp.float32)  # (out, 1)
        params += [wt, bc]
        param_bytes += 4 * (_round_up(int(wt.shape[0]), 8) * _round_up(int(wt.shape[1]), 128)
                            + _round_up(int(bc.shape[0]), 8) * 128)

    # x tiled along batch; parameters replicated (VMEM-resident, tiny).
    in_specs = [pl.BlockSpec((tb, traj), lambda i: (i, 0))]
    for arr in params:
        in_specs.append(pl.BlockSpec(arr.shape, lambda i: (0, 0)))
    # Lane-dense output: one (1, bs) row, each grid step writes a (1, tb) slab.
    out_spec = pl.BlockSpec((1, tb), lambda i: (0, i))

    vmem_limit = tb * per_row_bytes + param_bytes + (2 << 20)
    vmem_limit = int(min(max(vmem_limit, 4 << 20), 32 << 20))

    flops = 2 * bs * sum(int(w.shape[0]) * int(w.shape[1]) for w in weights)
    bytes_accessed = bs * traj * 4 + sum(int(p.size) * 4 for p in params) + bs * 4

    out = pl.pallas_call(
        _make_mlp_kernel(n_layers),
        out_shape=jax.ShapeDtypeStruct((1, bs), jnp.float32),
        grid=(num_tiles,),
        in_specs=in_specs,
        out_specs=out_spec,
        compiler_params=pltpu.CompilerParams(
            dimension_semantics=("parallel",),
            vmem_limit_bytes=vmem_limit,
        ),
        cost_estimate=pl.CostEstimate(
            flops=flops, transcendentals=0, bytes_accessed=int(bytes_accessed)),
    )(trajectory.astype(jnp.float32), *params)

    return out[0]


def init_mlp_params(key, trajectory_size, hidden_sizes):
    """Deterministic synthetic init of the MLP (Linear stack) parameters."""
    sizes = [trajectory_size] + list(hidden_sizes) + [1]
    weights, biases = [], []
    for i in range(len(sizes) - 1):
        key, kw, kb = jax.random.split(key, 3)
        scale = 1.0 / jnp.sqrt(jnp.float32(sizes[i]))
        w = jax.random.uniform(kw, (sizes[i], sizes[i + 1]), jnp.float32, -scale, scale)
        b = jax.random.uniform(kb, (1, sizes[i + 1]), jnp.float32, -scale, scale)
        weights.append(w)
        biases.append(b)
    return weights, biases


def deepc_score_reference(trajectory, weights, biases):
    """Plain-JAX f32 reference (matches the kernel's all-f32 strategy)."""
    h = trajectory.astype(jnp.float32)
    for li in range(len(weights) - 1):
        h = jnp.maximum(h @ weights[li] + biases[li], 0.0)
    return (h @ weights[-1] + biases[-1])[:, 0]


# TODO(synk): the 'QP', 'L1', 'L12', 'L12Prox' approximator branches depend on
# external iterative solver classes (QPSolver, L1MinimizationSolver, L12Solver,
# L12ProxSolver) not defined in this module; only the 'MLP' branch is implemented.

if __name__ == "__main__":
    # Module hyperparameters consistent with the forward:
    n_in, n_out, N = 2, 2, 8
    trajectory_size = N * (n_in + n_out)   # 32
    hidden_sizes = [32, 32]                # approximator_size for 'MLP'

    key = jax.random.PRNGKey(0)
    key, kparams, kx1, kx2 = jax.random.split(key, 4)
    weights, biases = init_mlp_params(kparams, trajectory_size, hidden_sizes)

    score_fn = jax.jit(deepc_score_mlp)

    # bs=512 -> 2 aligned tiles of 256 rows; bs=300 -> 3 tiles of 128 with a
    # ragged (masked) last block and no wrapper-side padding copy.
    for bs, kx in ((512, kx1), (300, kx2)):
        trajectory = jax.random.normal(kx, (bs, trajectory_size), jnp.float32)
        scores = jax.block_until_ready(score_fn(trajectory, weights, biases))
        ref = deepc_score_reference(trajectory, weights, biases)
        assert scores.shape == (bs,), scores.shape
        max_err = jnp.max(jnp.abs(scores - ref))
        assert jnp.allclose(scores, ref, atol=2e-3, rtol=2e-3), (bs, max_err)

    print("KERNEL_OK")
</pallas_src>

<mosaic_0001>
module attributes {stable_mosaic.version = 11 : i64} {
  func.func @kernel(%arg0: i32, %arg1: memref<256x32xf32, #tpu.memory_space<vmem>>, %arg2: memref<32x32xf32, #tpu.memory_space<vmem>>, %arg3: memref<32x1xf32, #tpu.memory_space<vmem>>, %arg4: memref<32x32xf32, #tpu.memory_space<vmem>>, %arg5: memref<32x1xf32, #tpu.memory_space<vmem>>, %arg6: memref<1x32xf32, #tpu.memory_space<vmem>>, %arg7: memref<1x1xf32, #tpu.memory_space<vmem>>, %arg8: memref<1x256xf32, #tpu.memory_space<vmem>>) attributes {dimension_semantics = [#tpu.dimension_semantics<parallel>], iteration_bounds = array<i64: 2>, scalar_prefetch = 0 : i64, scratch_operands = 0 : i64, tpu.core_type = #tpu.core_type<tc>, window_params = [{transform_indices = @transform_0, window_bounds = array<i64: 256, 32>}, {pipeline_mode = #tpu.pipeline_mode<synchronous>, transform_indices = @transform_1, window_bounds = array<i64: 32, 32>}, {pipeline_mode = #tpu.pipeline_mode<synchronous>, transform_indices = @transform_2, window_bounds = array<i64: 32, 1>}, {pipeline_mode = #tpu.pipeline_mode<synchronous>, transform_indices = @transform_3, window_bounds = array<i64: 32, 32>}, {pipeline_mode = #tpu.pipeline_mode<synchronous>, transform_indices = @transform_4, window_bounds = array<i64: 32, 1>}, {pipeline_mode = #tpu.pipeline_mode<synchronous>, transform_indices = @transform_5, window_bounds = array<i64: 1, 32>}, {pipeline_mode = #tpu.pipeline_mode<synchronous>, transform_indices = @transform_6, window_bounds = array<i64: 1, 1>}, {transform_indices = @transform_7, window_bounds = array<i64: 1, 256>}]} {
    %c0 = arith.constant 0 : index
    %c0_0 = arith.constant 0 : index
    %0 = vector.load %arg1[%c0, %c0_0] : memref<256x32xf32, #tpu.memory_space<vmem>>, vector<256x32xf32>
    %c0_1 = arith.constant 0 : index
    %c0_2 = arith.constant 0 : index
    %1 = vector.load %arg2[%c0_1, %c0_2] : memref<32x32xf32, #tpu.memory_space<vmem>>, vector<32x32xf32>
    %c0_3 = arith.constant 0 : index
    %c0_4 = arith.constant 0 : index
    %2 = vector.load %arg3[%c0_3, %c0_4] : memref<32x1xf32, #tpu.memory_space<vmem>>, vector<32x1xf32>
    %cst = arith.constant dense<0.000000e+00> : vector<32x256xf32>
    %3 = tpu.matmul %1, %0, %cst {dimension_numbers = #tpu.dot_dimension_numbers<[1], [1], [0], [0], [0, 0, 1, 0], [], []>} : vector<32x32xf32>, vector<256x32xf32>, vector<32x256xf32> -> vector<32x256xf32>
    %4 = vector.broadcast %2 : vector<32x1xf32> to vector<32x256xf32>
    %5 = arith.addf %3, %4 : vector<32x256xf32>
    %cst_5 = arith.constant 0.000000e+00 : f32
    %6 = vector.broadcast %cst_5 : f32 to vector<32x256xf32>
    %7 = arith.maximumf %5, %6 : vector<32x256xf32>
    %c0_6 = arith.constant 0 : index
    %c0_7 = arith.constant 0 : index
    %8 = vector.load %arg4[%c0_6, %c0_7] : memref<32x32xf32, #tpu.memory_space<vmem>>, vector<32x32xf32>
    %c0_8 = arith.constant 0 : index
    %c0_9 = arith.constant 0 : index
    %9 = vector.load %arg5[%c0_8, %c0_9] : memref<32x1xf32, #tpu.memory_space<vmem>>, vector<32x1xf32>
    %cst_10 = arith.constant dense<0.000000e+00> : vector<32x256xf32>
    %10 = tpu.matmul %8, %7, %cst_10 {dimension_numbers = #tpu.dot_dimension_numbers<[1], [0], [0], [1], [0, 0, 1, 1], [], []>} : vector<32x32xf32>, vector<32x256xf32>, vector<32x256xf32> -> vector<32x256xf32>
    %11 = vector.broadcast %9 : vector<32x1xf32> to vector<32x256xf32>
    %12 = arith.addf %10, %11 : vector<32x256xf32>
    %cst_11 = arith.constant 0.000000e+00 : f32
    %13 = vector.broadcast %cst_11 : f32 to vector<32x256xf32>
    %14 = arith.maximumf %12, %13 : vector<32x256xf32>
    %c0_12 = arith.constant 0 : index
    %c0_13 = arith.constant 0 : index
    %15 = vector.load %arg6[%c0_12, %c0_13] : memref<1x32xf32, #tpu.memory_space<vmem>>, vector<1x32xf32>
    %c0_14 = arith.constant 0 : index
    %c0_15 = arith.constant 0 : index
    %16 = vector.load %arg7[%c0_14, %c0_15] : memref<1x1xf32, #tpu.memory_space<vmem>>, vector<1x1xf32>
    %cst_16 = arith.constant dense<0.000000e+00> : vector<1x256xf32>
    %17 = tpu.matmul %15, %14, %cst_16 {dimension_numbers = #tpu.dot_dimension_numbers<[1], [0], [0], [1], [0, 0, 1, 1], [], []>} : vector<1x32xf32>, vector<32x256xf32>, vector<1x256xf32> -> vector<1x256xf32>
    %18 = vector.broadcast %16 : vector<1x1xf32> to vector<1x256xf32>
    %19 = arith.addf %17, %18 : vector<1x256xf32>
    %c0_17 = arith.constant 0 : index
    %c0_18 = arith.constant 0 : index
    %20 = vector.load %arg8[%c0_17, %c0_18] : memref<1x256xf32, #tpu.memory_space<vmem>>, vector<1x256xf32>
    tpu.vector_store %arg8[%c0_17, %c0_18], %19 {strides = array<i32>} : memref<1x256xf32, #tpu.memory_space<vmem>>, vector<1x256xf32>,
    return
  }
  func.func @transform_0(%arg0: i32) -> (i32, i32) {
    %c0_i32 = arith.constant 0 : i32
    %c0_i32_0 = arith.constant 0 : i32
    return %arg0, %c0_i32 : i32, i32
  }
  func.func @transform_1(%arg0: i32) -> (i32, i32) {
    %c0_i32 = arith.constant 0 : i32
    %c0_i32_0 = arith.constant 0 : i32
    %c0_i32_1 = arith.constant 0 : i32
    return %c0_i32, %c0_i32_0 : i32, i32
  }
  func.func @transform_2(%arg0: i32) -> (i32, i32) {
    %c0_i32 = arith.constant 0 : i32
    %c0_i32_0 = arith.constant 0 : i32
    %c0_i32_1 = arith.constant 0 : i32
    return %c0_i32, %c0_i32_0 : i32, i32
  }
  func.func @transform_3(%arg0: i32) -> (i32, i32) {
    %c0_i32 = arith.constant 0 : i32
    %c0_i32_0 = arith.constant 0 : i32
    %c0_i32_1 = arith.constant 0 : i32
    return %c0_i32, %c0_i32_0 : i32, i32
  }
  func.func @transform_4(%arg0: i32) -> (i32, i32) {
    %c0_i32 = arith.constant 0 : i32
    %c0_i32_0 = arith.constant 0 : i32
    %c0_i32_1 = arith.constant 0 : i32
    return %c0_i32, %c0_i32_0 : i32, i32
  }
  func.func @transform_5(%arg0: i32) -> (i32, i32) {
    %c0_i32 = arith.constant 0 : i32
    %c0_i32_0 = arith.constant 0 : i32
    %c0_i32_1 = arith.constant 0 : i32
    return %c0_i32, %c0_i32_0 : i32, i32
  }
  func.func @transform_6(%arg0: i32) -> (i32, i32) {
    %c0_i32 = arith.constant 0 : i32
    %c0_i32_0 = arith.constant 0 : i32
    %c0_i32_1 = arith.constant 0 : i32
    return %c0_i32, %c0_i32_0 : i32, i32
  }
  func.func @transform_7(%arg0: i32) -> (i32, i32) {
    %c0_i32 = arith.constant 0 : i32
    %c0_i32_0 = arith.constant 0 : i32
    return %c0_i32, %arg0 : i32, i32
  }
}

</mosaic_0001>

<bundles_post_ra>
// kernel: deepc_score_mlp.1
= control target key start
LH: loop header
LB: loop body
LE: loop exit
PB: predicated region body
PF: predicated region fallthrough
CT: control target
= control target key end

     0   :  { %s1334_s0 = inlined_call_operand.vmem [shape: f32[512,32], index: 0, kind: input, shape index: {}]   ;;  %s1335_s1 = inlined_call_operand.vmem [shape: f32[32,32], index: 1, kind: input, shape index: {}]   ;;  %s1336_s2 = inlined_call_operand.vmem [shape: f32[32,1], index: 2, kind: input, shape index: {}]   ;;  %s1337_s3 = inlined_call_operand.vmem [shape: f32[32,32], index: 3, kind: input, shape index: {}]   ;;  %s1338_s4 = inlined_call_operand.vmem [shape: f32[32,1], index: 4, kind: input, shape index: {}]   ;;  %s1339_s5 = inlined_call_operand.vmem [shape: f32[1,32], index: 5, kind: input, shape index: {}]   ;;  %s1340_s6 = inlined_call_operand.<no memory space> [shape: f32[1,1], index: 6, kind: input, shape index: {}]   ;;  %s1341_s7 = inlined_call_operand.hbm [shape: f32[1,512], index: 7, kind: output, shape index: {}]  }
   0x1   :  { %v12_v0 = vstv %s1340_s6 }
   0x2   :  { %13 = vst [vmem:[#allocation2] sm:$0x1] %v12_v0 }
   0x3   :  { %14 = vsyncpa [#allocation4], 0 }
   0x4   :  { %16 = vsyncpa [#allocation4 + $0x1], 0  ;;  %s1114_s26 = smov 0   ;;  %s1116_s27 = smov 0  }
   0x5   :  { %s1118_s28 = smov 0   ;;  %s1120_s29 = smov 0  }
   0x6 LB: > { %s866_s6 = sadd.s32 4294967295, %s1065_s29   ;;  %s867_s30 = sadd.s32 4294967294, %s1065_s29   ;;  %s1065_s29 = sphi %s1120_s29, %s1347_s29   ;;  %s1061_s28 = sphi %s1118_s28, %s1346_s28   ;;  %s1057_s27 = sphi %s1116_s27, %s1345_s27   ;;  %s1053_s26 = sphi %s1114_s26, %s1344_s26  }
   0x7   : > { %s1137_s8 = sadd.s32 1, %s1065_s29   ;;  %s181_s9 = sadd.s32 1, %s1061_s28 }
   0x8   : > { %s178_s10 = ssub.s32 %s1065_s29, %s1137_s8  ;;  %p191_p0 = scmp.ne.s32.totalorder %s1061_s28, %s1057_s27 }
   0x9   : > { %p179_p1 = scmp.eq.s32.totalorder %s178_s10, 0  ;;  %p192_p2 = scmp.eq.s32.totalorder %s866_s6, 1 }
   0xa   : > { %p197_p3 = scmp.ne.s32.totalorder %s1057_s27, %s1053_s26  ;;  %p198_p4 = scmp.eq.s32.totalorder %s867_s30, 1 }
   0xb   : > { %s1147_s11 = scalar_select %p179_p1, %s1061_s28, %s181_s9  }
   0xc   : > { %p1149_p5 = por %p192_p2, %p191_p0  ;;  %p1153_p6 = por %p198_p4, %p197_p3 }
   0xd   : > { %p870_p7 = scmp.ge.s32.totalorder %s1065_s29, 1  ;;  %p243_p8 = scmp.lt.s32.totalorder %s1065_s29, 3 }
   0xf   : > { %p244_p9 = pnand %p870_p7, %p243_p8 }
  0x10   : > { %s1159_s14 = sshll.u32 (!%p244_p9), %s866_s6, 5  ;;  %s272_s24 = sand.u32 (!%p244_p9), 1, %s1057_s27  }
  0x11   : > { %247 = sbr.rel (%p244_p9) target bundleno = 745 (0x2e9), region = 48  ;;  %p276_p10 = scmp.lt.s32.totalorder (!%p244_p9), %s1159_s14, 63 }
  0x12   : > { %s871_s25 = sshll.u32 (!%p244_p9), %s272_s24, 1  ;;  %s806_s15 = scalar_lea.hbm (!%p244_p9), %s1341_s7, %s1159_s14 }
  0x13   : > { %s794_s16 = scalar_lea.sflag (!%p244_p9), [#allocation4], %s272_s24  ;;  %s1070_s18 = smov (!%p244_p9), [#allocation3]  }
  0x14   : > { %s1009_s19 = sshll.u32 (!%p244_p9), %s1070_s18, 4  ;;  %s1010_s19 = int_to_ptr.vmem [resolvable:$false] %s1009_s19 }
  0x15   : > { %s1011_s20 = scalar_lea.vmem (!%p244_p9), %s1010_s19, 64 }
  0x16   : > { %vm342_vm0 = vcmask 261120   ;;  %v1164_v1 = vld [vmem:[%s1335_s1] sm:$0xff]  ;;  %v1067_v2 = vmov 0   ;;  %v321_v3 = vld [vmem:[%s1336_s2 + $0x18] sm:$0xff]  ;;  %v319_v4 = vld [vmem:[%s1336_s2 + $0x8] sm:$0xff]  ;;  %s277_s21 = scalar_select %p276_p10, %s1159_s14, 63 }
  0x17   : > { %953 = vmatprep.mubr.msk.f32.mxu0 %vm342_vm0, %v1164_v1  ;;  %1004 = vset.pattern.permute.xlu1 %v1067_v2  ;;  %v318_v5 = vld [vmem:[%s1336_s2] sm:$0xff]  ;;  %v320_v6 = vld [vmem:[%s1336_s2 + $0x10] sm:$0xff]  ;;  %v555_v11 = vld [vmem:[%s1338_s4 + $0x18] sm:$0xff]  ;;  %v1068_v47 = vmov 0.0  }
  0x18   : > { %1003 = vset.pattern.permute.xlu0 %v1067_v2  ;;  %329 = vperm.xlu1 %1004, %v319_v4   ;;  %s873_s6 = sshll.u32 %s277_s21, 3  ;;  %v554_v7 = vld [vmem:[%s1338_s4 + $0x10] sm:$0xff]  ;;  %v552_v14 = vld [vmem:[%s1338_s4] sm:$0xff]  ;;  %v553_v15 = vld [vmem:[%s1338_s4 + $0x8] sm:$0xff] }
  0x19   : > { %339 = vperm.xlu0 %1003, %v321_v3   ;;  %s1185_s10 = scalar_lea.vmem %s1334_s0, %s873_s6  ;;  %v686_v18 = vld [vmem:[#allocation2] sm:$0x1]  ;;  %v315_v44 = vld [vmem:[%s1335_s1 + $0x8] sm:$0xff]  ;;  %v316_v45 = vld [vmem:[%s1335_s1 + $0x10] sm:$0xff]  ;;  %652 = vmatprep.mubr.f32.mxu1 %v1068_v47  ;;  %s274_s6 = scalar_lea.vmem [#allocation3], %s871_s25 }
  0x1a   : > { %v313_v8 = vld [vmem:[%s1185_s10 + $0xf8] sm:$0xff]  ;;  %v312_v10 = vld [vmem:[%s1185_s10 + $0xf0] sm:$0xff]  ;;  %v311_v13 = vld [vmem:[%s1185_s10 + $0xe8] sm:$0xff]  ;;  %s808_s30 = sshll.u32 %s274_s6, 4  ;;  %s809_s30 = int_to_ptr.vmem [resolvable:$true] %s808_s30 }
  0x1b   : > { %v297_v9 = vld [vmem:[%s1185_s10 + $0x78] sm:$0xff]  ;;  %921 = vmatprep.subr.msk.mxu0 %vm342_vm0, %v313_v8  ;;  %v296_v12 = vld [vmem:[%s1185_s10 + $0x70] sm:$0xff]  ;;  %v295_v16 = vld [vmem:[%s1185_s10 + $0x68] sm:$0xff]  ;;  %s1005_s17 = scalar_lea.vmem %s809_s30, 32  ;;  %p1012_p0 = scmp.lt.s32.totalorder %s809_s30, %s1010_s19 }
  0x1c   : > { %324 = vperm.xlu1 %1004, %v318_v5   ;;  %922 = vmatpush3.xpose.msk.msra.mxu0 %vm342_vm0, %v297_v9  ;;  %v310_v17 = vld [vmem:[%s1185_s10 + $0xe0] sm:$0xff]  ;;  %v309_v20 = vld [vmem:[%s1185_s10 + $0xd8] sm:$0xff]  ;;  %v308_v22 = vld [vmem:[%s1185_s10 + $0xd0] sm:$0xff]  ;;  %p1006_p11 = scmp.ne.s32.totalorder %s809_s30, %s1005_s17  ;;  %p1013_p1 = scmp.lt.s32.totalorder %s1011_s20, %s1005_s17 }
  0x1d   : > { %334 = vperm.xlu0 %1003, %v320_v6   ;;  %923 = vmatprep.subr.msk.mxu0 %vm342_vm0, %v312_v10  ;;  %v294_v19 = vld [vmem:[%s1185_s10 + $0x60] sm:$0xff]  ;;  %v293_v21 = vld [vmem:[%s1185_s10 + $0x58] sm:$0xff]  ;;  %v292_v23 = vld [vmem:[%s1185_s10 + $0x50] sm:$0xff] }
  0x1e   : > { %v307_v24 = vld [vmem:[%s1185_s10 + $0xc8] sm:$0xff]  ;;  %v306_v26 = vld [vmem:[%s1185_s10 + $0xc0] sm:$0xff]  ;;  %v305_v28 = vld [vmem:[%s1185_s10 + $0xb8] sm:$0xff]  ;;  %p1007_p12 = pnand %p1006_p11, %p1149_p5  ;;  %p1014_p2 = por %p1013_p1, %p1012_p0 }
  0x1f   : > { %v291_v25 = vld [vmem:[%s1185_s10 + $0x48] sm:$0xff]  ;;  %v290_v27 = vld [vmem:[%s1185_s10 + $0x40] sm:$0xff]  ;;  %v289_v29 = vld [vmem:[%s1185_s10 + $0x38] sm:$0xff] }
  0x20   : > { %568 = vperm.xlu1 %1004, %v554_v7   ;;  %924 = vmatpush3.xpose.msk.msra.mxu0 %vm342_vm0, %v296_v12  ;;  %v304_v30 = vld [vmem:[%s1185_s10 + $0xb0] sm:$0xff]  ;;  %v303_v32 = vld [vmem:[%s1185_s10 + $0xa8] sm:$0xff]  ;;  %v302_v34 = vld [vmem:[%s1185_s10 + $0xa0] sm:$0xff]  ;;  %p1008_p13 = pneg %p1007_p12 }
  0x21   : > { %573 = vperm.xlu0 %1003, %v555_v11   ;;  %925 = vmatprep.subr.msk.mxu0 %vm342_vm0, %v311_v13  ;;  %v288_v31 = vld [vmem:[%s1185_s10 + $0x30] sm:$0xff]  ;;  %v287_v33 = vld [vmem:[%s1185_s10 + $0x28] sm:$0xff]  ;;  %v286_v35 = vld [vmem:[%s1185_s10 + $0x20] sm:$0xff] }
  0x22   : > { %v301_v36 = vld [vmem:[%s1185_s10 + $0x98] sm:$0xff]  ;;  %v300_v38 = vld [vmem:[%s1185_s10 + $0x90] sm:$0xff]  ;;  %v299_v40 = vld [vmem:[%s1185_s10 + $0x88] sm:$0xff]  ;;  %p1015_p3 = pnand %p1014_p2, %p1008_p13 }
  0x23   : > { %v285_v37 = vld [vmem:[%s1185_s10 + $0x18] sm:$0xff]  ;;  %v284_v39 = vld [vmem:[%s1185_s10 + $0x10] sm:$0xff]  ;;  %v283_v41 = vld [vmem:[%s1185_s10 + $0x8] sm:$0xff] }
  0x24   : > { %558 = vperm.xlu1 %1004, %v552_v14   ;;  %926 = vmatpush3.xpose.msk.msra.mxu0 %vm342_vm0, %v295_v16  ;;  %v298_v42 = vld [vmem:[%s1185_s10 + $0x80] sm:$0xff]  ;;  %v317_v46 = vld [vmem:[%s1335_s1 + $0x18] sm:$0xff]  ;;  %v549_v13 = vld [vmem:[%s1337_s3 + $0x8] sm:$0xff] }
  0x25   : > { %563 = vperm.xlu0 %1003, %v553_v15   ;;  %927 = vmatprep.subr.msk.mxu0 %vm342_vm0, %v310_v17  ;;  %v282_v43 = vld [vmem:[%s1185_s10] sm:$0xff]  ;;  %v550_v14 = vld [vmem:[%s1337_s3 + $0x10] sm:$0xff]  ;;  %v551_v15 = vld [vmem:[%s1337_s3 + $0x18] sm:$0xff] }
  0x26   : > { %v548_v12 = vld [vmem:[%s1337_s3] sm:$0xff] }
  0x28   : > { %928 = vmatpush3.xpose.msk.msra.mxu0 %vm342_vm0, %v294_v19 }
  0x29   : > { %689 = vperm.xlu0 %1003, %v686_v18   ;;  %929 = vmatprep.subr.msk.mxu0 %vm342_vm0, %v309_v20 }
  0x2c   : > { %930 = vmatpush3.xpose.msk.msra.mxu0 %vm342_vm0, %v293_v21 }
  0x2d   : > { %931 = vmatprep.subr.msk.mxu0 %vm342_vm0, %v308_v22 }
  0x30   : > { %932 = vmatpush3.xpose.msk.msra.mxu0 %vm342_vm0, %v292_v23 }
  0x31   : > { %933 = vmatprep.subr.msk.mxu0 %vm342_vm0, %v307_v24 }
  0x34   : > { %934 = vmatpush3.xpose.msk.msra.mxu0 %vm342_vm0, %v291_v25 }
  0x35   : > { %935 = vmatprep.subr.msk.mxu0 %vm342_vm0, %v306_v26 }
  0x38   : > { %936 = vmatpush3.xpose.msk.msra.mxu0 %vm342_vm0, %v290_v27 }
  0x39   : > { %937 = vmatprep.subr.msk.mxu0 %vm342_vm0, %v305_v28 }
  0x3c   : > { %938 = vmatpush3.xpose.msk.msra.mxu0 %vm342_vm0, %v289_v29 }
  0x3d   : > { %939 = vmatprep.subr.msk.mxu0 %vm342_vm0, %v304_v30 }
  0x40   : > { %940 = vmatpush3.xpose.msk.msra.mxu0 %vm342_vm0, %v288_v31 }
  0x41   : > { %941 = vmatprep.subr.msk.mxu0 %vm342_vm0, %v303_v32 }
  0x44   : > { %942 = vmatpush3.xpose.msk.msra.mxu0 %vm342_vm0, %v287_v33 }
  0x45   : > { %943 = vmatprep.subr.msk.mxu0 %vm342_vm0, %v302_v34 }
  0x48   : > { %944 = vmatpush3.xpose.msk.msra.mxu0 %vm342_vm0, %v286_v35 }
  0x49   : > { %945 = vmatprep.subr.msk.mxu0 %vm342_vm0, %v301_v36 }
  0x4c   : > { %946 = vmatpush3.xpose.msk.msra.mxu0 %vm342_vm0, %v285_v37 }
  0x4d   : > { %947 = vmatprep.subr.msk.mxu0 %vm342_vm0, %v300_v38 }
  0x50   : > { %948 = vmatpush3.xpose.msk.msra.mxu0 %vm342_vm0, %v284_v39 }
  0x51   : > { %949 = vmatprep.subr.msk.mxu0 %vm342_vm0, %v299_v40 }
  0x54   : > { %950 = vmatpush3.xpose.msk.msra.mxu0 %vm342_vm0, %v283_v41 }
  0x55   : > { %951 = vmatprep.subr.msk.mxu0 %vm342_vm0, %v298_v42 }
  0x58   : > { %952 = vmatpush3.xpose.msk.msra.mxu0 %vm342_vm0, %v282_v43 }
  0x5b   : > { %954 = vmatmul.mubr.msk.f32.vlgmr.msra.gmra.mxu0 %vm342_vm0, %v1164_v1 }
  0x5c   : > { %955 = vmatprep.mubr.msk.f32.mxu0 %vm342_vm0, %v315_v44 }
  0x5f   : > { %956 = vmatmul.mubr.msk.f32.gmra.mxu0 %vm342_vm0, %v315_v44  ;;  %v685_v44 = vld [vmem:[%s1339_s5] sm:$0x1] }
  0x60   : > { %957 = vmatprep.mubr.msk.f32.mxu0 %vm342_vm0, %v316_v45 }
  0x63   : > { %958 = vmatmul.mubr.msk.f32.gmra.mxu0 %vm342_vm0, %v316_v45  ;;  %v692_v45 = vlaneseq }
  0x64   : > { %959 = vmatprep.mubr.msk.f32.mxu0 %vm342_vm0, %v317_v46 }
  0x65   : > { %vm790_vm1 = vcmp.lt.s32.totalorder %v692_v45, 256 }
  0x67   : > { %960 = vmatmul.mubr.msk.f32.gmra.mxu0 %vm342_vm0, %v317_v46  ;;  %v693_v46 = vshrl.u32 %v692_v45, 7 }
  0x93   : > { %v330_v55 = vpop.permute.xlu1 %329 }
  0x94   : > { %v340_v52 = vpop.permute.xlu0 %339 }
  0x97   : > { %v325_v63 = vpop.permute.xlu1 %324 }
  0x98   : > { %v335_v57 = vpop.permute.xlu0 %334 }
  0x9b   : > { %v569_v23 = vpop.permute.xlu1 %568 }
  0x9c   : > { %v574_v21 = vpop.permute.xlu0 %573 }
  0x9f   : > { %v559_v33 = vpop.permute.xlu1 %558 }
  0xa0   : > { %v564_v29 = vpop.permute.xlu0 %563 }
 0x11b   : > { %v517_v48 = vpop.f32.mrf.mxu0 }
 0x11c   : > { %v518_v6 = vadd.f32 %v517_v48, %v325_v63 }
 0x11d   : > { %v519_v49 = vpop.f32.mrf.mxu0 }
 0x11e   : > { %v520_v4 = vadd.f32 %v519_v49, %v325_v63  ;;  %v540_v11 = vmax.f32 %v518_v6, 0.0  ;;  %v694_v49 = vsub.s32 0, %v693_v46 }
 0x11f   : > { %v523_v50 = vpop.f32.mrf.mxu0 }
 0x120   : > { %v524_v2 = vadd.f32 %v523_v50, %v330_v55  ;;  %v541_v10 = vmax.f32 %v520_v4, 0.0  ;;  %v690_v50 = vpop.permute.xlu0 %689 }
 0x121   : > { %v525_v51 = vpop.f32.mrf.mxu0 }
 0x122   : > { %v526_v0 = vadd.f32 %v525_v51, %v330_v55  ;;  %v542_v9 = vmax.f32 %v524_v2, 0.0 }
 0x123   : > { %v529_v53 = vpop.f32.mrf.mxu0 }
 0x124   : > { %v530_v62 = vadd.f32 %v529_v53, %v335_v57  ;;  %v543_v8 = vmax.f32 %v526_v0, 0.0  ;;  %v695_v53 = vrot.slane %v690_v50, %v694_v49 }
 0x125   : > { %v531_v54 = vpop.f32.mrf.mxu0 }
 0x126   : > { %v532_v60 = vadd.f32 %v531_v54, %v335_v57  ;;  %v544_v7 = vmax.f32 %v530_v62, 0.0 }
 0x127   : > { %v535_v56 = vpop.f32.mrf.mxu0 }
 0x128   : > { %v536_v58 = vadd.f32 %v535_v56, %v340_v52  ;;  %v545_v5 = vmax.f32 %v532_v60, 0.0 }
 0x129   : > { %v537_v59 = vpop.f32.mrf.mxu0 }
 0x12a   : > { %v538_v61 = vadd.f32 %v537_v59, %v340_v52  ;;  %v546_v3 = vmax.f32 %v536_v58, 0.0 }
 0x12c   : > { %v547_v1 = vmax.f32 %v538_v61, 0.0 }
 0x12e   : > { %612 = vmatprep.subr.mxu1 %v547_v1 }
 0x12f   : > { %613 = vmatpush1.msra.mxu1 %v546_v3 }
 0x130   : > { %614 = vmatprep.subr.mxu1 %v545_v5 }
 0x131   : > { %615 = vmatpush1.msra.mxu1 %v544_v7 }
 0x132   : > { %616 = vmatprep.subr.mxu1 %v543_v8 }
 0x133   : > { %617 = vmatpush1.msra.mxu1 %v542_v9 }
 0x134   : > { %618 = vmatprep.subr.mxu1 %v541_v10 }
 0x135   : > { %619 = vmatpush1.msra.mxu1 %v540_v11 }
 0x136   : > { %910 = vmatmul.mubr.msk.f32.vlgmr.msra.gmra.mxu1 %vm342_vm0, %v548_v12 }
 0x137   : > { %658 = vmatprep.mubr.f32.mxu1 %v1068_v47 }
 0x13a   : > { %911 = vmatmul.mubr.msk.f32.gmra.mxu1 %vm342_vm0, %v549_v13 }
 0x13b   : > { %664 = vmatprep.mubr.f32.mxu1 %v1068_v47 }
 0x13e   : > { %912 = vmatmul.mubr.msk.f32.gmra.mxu1 %vm342_vm0, %v550_v14 }
 0x13f   : > { %670 = vmatprep.mubr.f32.mxu1 %v1068_v47 }
 0x142   : > { %913 = vmatmul.mubr.msk.f32.gmra.mxu1 %vm342_vm0, %v551_v15 }
 0x143   : > { %763 = vmatprep.mubr.f32.mxu1 %v1068_v47  ;;  %v1069_v47 = vmov 1966171168  }
 0x144   : > { %v774_v48 = vunpack.c.l.s4 %v1069_v47 }
 0x146   : > { %v775_v51 = vunpack.c.0.s8 %v774_v48 }
 0x148   : > { %v778_v57 = vsub.s32 %v775_v51, %v693_v46 }
 0x1f6   : > { %v654_v16 = vpop.f32.mrf.mxu1 }
 0x1f7   : > { %v655_v38 = vadd.f32 %v654_v16, %v559_v33 }
 0x1f8   : > { %v656_v17 = vpop.f32.mrf.mxu1 }
 0x1f9   : > { %v657_v36 = vadd.f32 %v656_v17, %v559_v33  ;;  %v677_v43 = vmax.f32 %v655_v38, 0.0 }
 0x1fa   : > { %v660_v18 = vpop.f32.mrf.mxu1 }
 0x1fb   : > { %v661_v34 = vadd.f32 %v660_v18, %v564_v29  ;;  %v678_v42 = vmax.f32 %v657_v36, 0.0 }
 0x1fc   : > { %v662_v19 = vpop.f32.mrf.mxu1 }
 0x1fd   : > { %v663_v31 = vadd.f32 %v662_v19, %v564_v29  ;;  %v679_v41 = vmax.f32 %v661_v34, 0.0 }
 0x1fe   : > { %v666_v20 = vpop.f32.mrf.mxu1 }
 0x1ff   : > { %v667_v30 = vadd.f32 %v666_v20, %v569_v23  ;;  %v680_v40 = vmax.f32 %v663_v31, 0.0 }
 0x200   : > { %v668_v22 = vpop.f32.mrf.mxu1 }
 0x201   : > { %v669_v27 = vadd.f32 %v668_v22, %v569_v23  ;;  %v681_v39 = vmax.f32 %v667_v30, 0.0 }
 0x202   : > { %v672_v24 = vpop.f32.mrf.mxu1 }
 0x203   : > { %v673_v25 = vadd.f32 %v672_v24, %v574_v21  ;;  %v682_v37 = vmax.f32 %v669_v27, 0.0 }
 0x204   : > { %v674_v26 = vpop.f32.mrf.mxu1 }
 0x205   : > { %v675_v28 = vadd.f32 %v674_v26, %v574_v21  ;;  %v683_v35 = vmax.f32 %v673_v25, 0.0 }
 0x207   : > { %v684_v32 = vmax.f32 %v675_v28, 0.0 }
 0x209   : > { %723 = vmatprep.subr.mxu1 %v684_v32 }
 0x20a   : > { %724 = vmatpush1.msra.mxu1 %v683_v35 }
 0x20b   : > { %725 = vmatprep.subr.mxu1 %v682_v37 }
 0x20c   : > { %726 = vmatpush1.msra.mxu1 %v681_v39 }
 0x20d   : > { %727 = vmatprep.subr.mxu1 %v680_v40 }
 0x20e   : > { %728 = vmatpush1.msra.mxu1 %v679_v41 }
 0x20f   : > { %729 = vmatprep.subr.mxu1 %v678_v42 }
 0x210   : > { %730 = vmatpush1.msra.mxu1 %v677_v43 }
 0x211   : > { %914 = vmatmul.mubr.msk.f32.vlgmr.msra.gmra.mxu1 %vm342_vm0, %v685_v44 }
 0x2d1   : > { %v765_v52 = vpop.f32.mrf.mxu1 }
 0x2d2   : > { %v766_v55 = vadd.f32 %v765_v52, %v695_v53 }
 0x2d3   : > { %v767_v54 = vpop.f32.mrf.mxu1 }
 0x2d4   : > { %v768_v56 = vadd.f32 %v767_v54, %v695_v53 }
 0x2d6   : > { %v772_v58 = vcombine.low %v766_v55, %v768_v56 }
 0x2d8   : > { %v779_v59 = vrot.slane %v772_v58, %v778_v57 }
 0x2da   : > { %v786_v60 = vrot.slane %v779_v59, %v778_v57 }
 0x2dc   : > { %792 = vst.msk [vmem:[%s274_s6] sm:$0x3] %vm790_vm1, %v786_v60 }
 0x2dd   : > { %1018 = shalt.err (!%p1015_p3)
}
 0x2de   : > { %s1019_s21 = scalar_lea.hbm %s806_s15, 32  ;;  %s1023_s23 = scalar_lea.hbm %s1341_s7, 64 }
 0x2df   : > { %p1020_p4 = scmp.ne.s32.totalorder %s806_s15, %s1019_s21  ;;  %p1024_p9 = scmp.lt.s32.totalorder %s806_s15, %s1341_s7 }
 0x2e0   : > { %p1025_p10 = scmp.lt.s32.totalorder %s1023_s23, %s1019_s21 }
 0x2e1   : > { %p1021_p7 = pnand %p1020_p4, %p1149_p5 }
 0x2e2   : > { %p1026_p11 = por %p1025_p10, %p1024_p9 }
 0x2e3   : > { %p1022_p8 = pneg %p1021_p7 }
 0x2e5   : > { %p1027_p12 = pnand %p1026_p11, %p1022_p8 }
 0x2e7   : > { %1030 = shalt.err (!%p1027_p12)
}
 0x2e8   : > { %961 = dma.vmem_to_hbm [thread:$0]  (%p1149_p5), %s809_s30, 32, %s806_s15, %s794_s16  }
 0x2e9 PF: > { %p967_p13 = scmp.ge.s32.totalorder %s1065_s29, 2  ;;  %s820_s6 = sand.u32 1, %s1053_s26  }
 0x2ea   : > { %s821_s9 = scalar_lea.sflag [#allocation4], %s820_s6 }
 0x2eb   : > { %p964_p0 = pnand %p967_p13, %p1153_p6 }
 0x2ed   : > { %p965_p1 = pneg %p964_p0 }
 0x2ef   : > { %1048 = dma.done.wait (%p965_p1), %s821_s9, 32  }
 0x2f0   : > { %1050 = vsyncadd (%p965_p1), %s821_s9, 4294967264  ;;  %p19_p2 = scmp.ge.s32.totalorder %s1137_s8, 4   ;;  %s1344_s26 = smov %s1057_s27 }
 0x2f1   : > { %s1345_s27 = smov %s1061_s28  ;;  %s1346_s28 = smov %s1147_s11 }
 0x2f2   : > { %s1347_s29 = smov %s1137_s8  ;;  %21 = sbr.rel (!%p19_p2) target bundleno = 6 (0x6), region = 83 }
 0x2f7   :  { %826 = vsyncpa [#allocation4], 1 }
 0x2f8   :  { %828 = vsyncpa [#allocation4 + $0x1], 1 }

</bundles_post_ra>
